<compile_context>
chip_gen: v5e
topology: v5e:2x2
jax: 0.10.0
libtpu: 0.0.40
codegen_flags: <defaults>
</compile_context>

<pallas_src>
import math
import functools

import jax
import jax.numpy as jnp
from jax import lax
from jax.experimental import pallas as pl
from jax.experimental.pallas import tpu as pltpu


_LANE = 128


def _round_up(x, m):
    return (x + m - 1) // m * m


def _device_kind():
    try:
        return jax.devices()[0].device_kind.lower()
    except Exception:
        return ""


def _num_tensorcores():
    # v7x has 2 TensorCores per chip; v5e/v6e have 1.
    return 2 if "v7" in _device_kind() else 1


def _default_exp_dtype():
    # v6e / v7x EUP has a bf16 transcendental path (~2x exp throughput);
    # v5e and older have no bf16 VPU/EUP path -> keep exp in f32 there.
    kind = _device_kind()
    if "v6" in kind or "v7" in kind:
        return jnp.bfloat16
    return jnp.float32


def _attention_kernel(x_ref, wqkv_ref, bqkv_ref, wo_ref, bo_ref, o_ref,
                      qkv_ref, ctx_ref, *, seq_len, block_b, a_pad, exp_dtype):
    S = seq_len
    A = a_pad

    # ---- ONE stacked QKV projection over all block_b*S rows (fills the MXU
    # with a single push + single bias broadcast instead of block_b of each) ----
    x = x_ref[...].astype(jnp.bfloat16)                                 # (bS, E)
    qkv = jnp.dot(x, wqkv_ref[...],
                  preferred_element_type=jnp.float32) + bqkv_ref[...]   # (bS, 3*A_pad) f32
    # f32 scratch keeps the dynamic row slices below sublane-tile aligned.
    qkv_ref[...] = qkv

    # ---- per-batch-element softmax attention; fori_loop bounds vreg live
    # ranges (a fully-unrolled python loop keeps all iterations live -> spills) ----
    def body(i, carry):
        r0 = pl.multiple_of(i * S, S)
        # 128-lane-aligned segment slices -> free views (A is padded to A_pad).
        q = qkv_ref[pl.ds(r0, S), pl.ds(0, A)].astype(jnp.bfloat16)      # pre-scaled by 1/sqrt(A)
        k = qkv_ref[pl.ds(r0, S), pl.ds(A, A)].astype(jnp.bfloat16)
        v = qkv_ref[pl.ds(r0, S), pl.ds(2 * A, A)].astype(jnp.bfloat16)

        # scores = q @ k^T by contracting the last axes (no materialized k.T).
        s = lax.dot_general(q, k, (((1,), (1,)), ((), ())),
                            preferred_element_type=jnp.float32)          # (S, S) f32

        # Numerically stable softmax; exp in bf16 on v6e/v7x, f32 on v5e.
        m = jnp.max(s, axis=-1, keepdims=True)
        p = jnp.exp((s - m).astype(exp_dtype))
        denom = jnp.sum(p, axis=-1, keepdims=True, dtype=jnp.float32)
        inv = pl.reciprocal(denom, approx=True).astype(exp_dtype)
        attn = (p * inv).astype(jnp.bfloat16)

        ctx_ref[pl.ds(r0, S), :] = jnp.dot(attn, v,
                                           preferred_element_type=jnp.float32)
        return carry

    lax.fori_loop(0, block_b, body, 0)

    # ---- ONE stacked output projection + a single 2-D slab store ----
    y = jnp.dot(ctx_ref[...].astype(jnp.bfloat16), wo_ref[...],
                preferred_element_type=jnp.float32) + bo_ref[...]        # (bS, E) f32
    o_ref[...] = y.astype(o_ref.dtype)


def _pick_batch_block(B, max_tb=8, num_tensorcores=1):
    """Largest divisor of B <= max_tb.  Keep >= num_tensorcores grid steps only
    on multi-TensorCore chips (v7x); on 1-TC chips extra grid steps are pure
    per-step overhead."""
    if num_tensorcores > 1 and B >= num_tensorcores:
        cap = max(1, min(max_tb, B // num_tensorcores))
    else:
        cap = max(1, min(max_tb, B))
    for tb in range(cap, 0, -1):
        if B % tb == 0:
            return tb
    return 1


def single_head_attention(x, wq, bq, wk, bk, wv, bv, wo, bo, *, block_b=None):
    """x: (B, S, E) float32. Weights stored (in, out); biases stored (1, out)."""
    B, S, E = x.shape
    A = wq.shape[1]
    scale = 1.0 / math.sqrt(A)

    # Pad each q/k/v segment of the fused weight/bias to a 128-lane multiple so
    # the in-kernel segment slices are lane-tile aligned.  Zero padding is
    # mathematically inert (pads q,k,v columns and wo rows with zeros).
    A_pad = _round_up(A, _LANE)

    def pad_cols(w, b):
        return (jnp.pad(w, ((0, 0), (0, A_pad - A))),
                jnp.pad(b, ((0, 0), (0, A_pad - A))))

    wq_p, bq_p = pad_cols(wq * scale, bq * scale)   # fold 1/sqrt(A) into Q
    wk_p, bk_p = pad_cols(wk, bk)
    wv_p, bv_p = pad_cols(wv, bv)

    wqkv = jnp.concatenate([wq_p, wk_p, wv_p], axis=1).astype(jnp.bfloat16)  # (E, 3*A_pad)
    bqkv = jnp.concatenate([bq_p, bk_p, bv_p], axis=1).astype(jnp.float32)   # (1, 3*A_pad)
    wo_p = jnp.pad(wo, ((0, A_pad - A), (0, 0))).astype(jnp.bfloat16)        # (A_pad, E)
    bo_f32 = bo.astype(jnp.float32)

    num_tc = _num_tensorcores()
    if block_b is None:
        block_b = _pick_batch_block(B, num_tensorcores=num_tc)
    assert B % block_b == 0
    assert S % 8 == 0, "seq len must be a multiple of 8 (f32 sublane tile)"
    grid = (B // block_b,)
    rows = block_b * S
    exp_dtype = _default_exp_dtype()

    # Feed x (and the output) as a stacked (B*S, E) slab: one QKV/out GEMM per
    # grid step and a single lane-contiguous output store.
    x2d = x.reshape(B * S, E)

    # Explicit VMEM budget: double-buffered in/out blocks + resident weights +
    # f32 scratch (v5e scoped default is only 16 MiB; v7x physical is 64 MiB).
    est = (2 * 2 * rows * E * 4                          # in/out blocks (f32, double-buffered)
           + 2 * (E * 3 * A_pad * 2 + 3 * A_pad * 4)     # fused Wqkv / bqkv
           + 2 * (A_pad * E * 2 + E * 4)                 # Wout / bout
           + rows * 3 * A_pad * 4 + rows * A_pad * 4)    # qkv + ctx scratch
    vmem_limit = int(min(max(2 * est, 16 << 20), 64 << 20))

    kernel = functools.partial(_attention_kernel, seq_len=S, block_b=block_b,
                               a_pad=A_pad, exp_dtype=exp_dtype)

    out2d = pl.pallas_call(
        kernel,
        out_shape=jax.ShapeDtypeStruct((B * S, E), x.dtype),
        grid_spec=pltpu.PrefetchScalarGridSpec(
            num_scalar_prefetch=0,
            grid=grid,
            in_specs=[
                pl.BlockSpec((rows, E), lambda b: (b, 0)),           # x slab
                pl.BlockSpec((E, 3 * A_pad), lambda b: (0, 0)),      # fused Wqkv
                pl.BlockSpec((1, 3 * A_pad), lambda b: (0, 0)),      # fused bqkv
                pl.BlockSpec((A_pad, E), lambda b: (0, 0)),          # Wout
                pl.BlockSpec((1, E), lambda b: (0, 0)),              # bout
            ],
            out_specs=pl.BlockSpec((rows, E), lambda b: (b, 0)),
            scratch_shapes=[
                pltpu.VMEM((rows, 3 * A_pad), jnp.float32),          # stacked qkv
                pltpu.VMEM((rows, A_pad), jnp.float32),              # stacked ctx
            ],
        ),
        compiler_params=pltpu.CompilerParams(
            dimension_semantics=("parallel",),
            vmem_limit_bytes=vmem_limit),
    )(x2d, wqkv, bqkv, wo_p, bo_f32)

    return out2d.reshape(B, S, E)


def init_params(key, embed_dim, attention_dim):
    """Deterministic init mimicking nn.Linear's U(-1/sqrt(fan_in), 1/sqrt(fan_in))."""
    ks = jax.random.split(key, 8)

    def linear(kw, kb, fan_in, fan_out):
        bound = 1.0 / math.sqrt(fan_in)
        w = jax.random.uniform(kw, (fan_in, fan_out), jnp.float32, -bound, bound)
        b = jax.random.uniform(kb, (1, fan_out), jnp.float32, -bound, bound)
        return w, b

    wq, bq = linear(ks[0], ks[1], embed_dim, attention_dim)
    wk, bk = linear(ks[2], ks[3], embed_dim, attention_dim)
    wv, bv = linear(ks[4], ks[5], embed_dim, attention_dim)
    wo, bo = linear(ks[6], ks[7], attention_dim, embed_dim)
    return wq, bq, wk, bk, wv, bv, wo, bo


def reference(x, wq, bq, wk, bk, wv, bv, wo, bo):
    q = x @ wq + bq
    k = x @ wk + bk
    v = x @ wv + bv
    scores = jnp.einsum("bqa,bka->bqk", q, k) / math.sqrt(k.shape[-1])
    attn = jax.nn.softmax(scores, axis=-1)
    ctx = jnp.einsum("bqk,bka->bqa", attn, v)
    return ctx @ wo + bo


if __name__ == "__main__":
    B, S, E, A = 2, 8, 32, 16  # batch, seq, embed_dim, attention_dim

    key = jax.random.PRNGKey(0)
    kx, kp = jax.random.split(key)
    x = jax.random.normal(kx, (B, S, E), jnp.float32)
    params = init_params(kp, E, A)

    out = jax.block_until_ready(single_head_attention(x, *params))

    ref = reference(x, *params)
    assert out.shape == (B, S, E)
    # bf16 MXU operands, bf16 exp (on v6e/v7x) + approx reciprocal -> loosened
    # tolerance vs the f32 reference.
    max_err = jnp.max(jnp.abs(out - ref))
    assert jnp.allclose(out, ref, atol=5e-2, rtol=5e-2), f"max abs err {max_err}"

    print("KERNEL_OK")
</pallas_src>

<mosaic_0001>
module attributes {stable_mosaic.version = 11 : i64} {
  func.func @_attention_kernel(%arg0: i32, %arg1: memref<16x32xf32, #tpu.memory_space<vmem>>, %arg2: memref<32x384xbf16, #tpu.memory_space<vmem>>, %arg3: memref<1x384xf32, #tpu.memory_space<vmem>>, %arg4: memref<128x32xbf16, #tpu.memory_space<vmem>>, %arg5: memref<1x32xf32, #tpu.memory_space<vmem>>, %arg6: memref<16x32xf32, #tpu.memory_space<vmem>>, %arg7: memref<16x384xf32, #tpu.memory_space<vmem>>, %arg8: memref<16x128xf32, #tpu.memory_space<vmem>>) attributes {dimension_semantics = [#tpu.dimension_semantics<parallel>], iteration_bounds = array<i64: 1>, scalar_prefetch = 0 : i64, scratch_operands = 2 : i64, tpu.core_type = #tpu.core_type<tc>, window_params = [{transform_indices = @transform_0, window_bounds = array<i64: 16, 32>}, {pipeline_mode = #tpu.pipeline_mode<synchronous>, transform_indices = @transform_1, window_bounds = array<i64: 32, 384>}, {pipeline_mode = #tpu.pipeline_mode<synchronous>, transform_indices = @transform_2, window_bounds = array<i64: 1, 384>}, {pipeline_mode = #tpu.pipeline_mode<synchronous>, transform_indices = @transform_3, window_bounds = array<i64: 128, 32>}, {pipeline_mode = #tpu.pipeline_mode<synchronous>, transform_indices = @transform_4, window_bounds = array<i64: 1, 32>}, {transform_indices = @transform_5, window_bounds = array<i64: 16, 32>}]} {
    %c0 = arith.constant 0 : index
    %c0_0 = arith.constant 0 : index
    %0 = vector.load %arg1[%c0, %c0_0] : memref<16x32xf32, #tpu.memory_space<vmem>>, vector<16x32xf32>
    %1 = arith.truncf %0 : vector<16x32xf32> to vector<16x32xbf16>
    %c0_1 = arith.constant 0 : index
    %c0_2 = arith.constant 0 : index
    %2 = vector.load %arg2[%c0_1, %c0_2] : memref<32x384xbf16, #tpu.memory_space<vmem>>, vector<32x384xbf16>
    %cst = arith.constant dense<0.000000e+00> : vector<16x384xf32>
    %3 = tpu.matmul %1, %2, %cst {dimension_numbers = #tpu.dot_dimension_numbers<[1], [0], [0], [1], [0, 0, 1, 1], [], []>} : vector<16x32xbf16>, vector<32x384xbf16>, vector<16x384xf32> -> vector<16x384xf32>
    %c0_3 = arith.constant 0 : index
    %c0_4 = arith.constant 0 : index
    %4 = vector.load %arg3[%c0_3, %c0_4] : memref<1x384xf32, #tpu.memory_space<vmem>>, vector<1x384xf32>
    %5 = vector.broadcast %4 : vector<1x384xf32> to vector<16x384xf32>
    %6 = arith.addf %3, %5 : vector<16x384xf32>
    %c0_5 = arith.constant 0 : index
    %c0_6 = arith.constant 0 : index
    %7 = vector.load %arg7[%c0_5, %c0_6] : memref<16x384xf32, #tpu.memory_space<vmem>>, vector<16x384xf32>
    tpu.vector_store %arg7[%c0_5, %c0_6], %6 {strides = array<i32>} : memref<16x384xf32, #tpu.memory_space<vmem>>, vector<16x384xf32>,
    %c0_i32 = arith.constant 0 : i32
    %c2_i32 = arith.constant 2 : i32
    %8 = arith.addi %c0_i32, %c2_i32 : i32
    %c1_i32 = arith.constant 1 : i32
    scf.for %arg9 = %c0_i32 to %8 step %c1_i32  : i32 {
      %c8_i32 = arith.constant 8 : i32
      %17 = arith.muli %arg9, %c8_i32 : i32
      %18 = tpu.assume_multiple %17, 8 : i32
      %19 = arith.index_cast %18 : i32 to index
      %c0_17 = arith.constant 0 : index
      %20 = vector.load %arg7[%19, %c0_17] : memref<16x384xf32, #tpu.memory_space<vmem>>, vector<8x128xf32>
      %21 = arith.truncf %20 : vector<8x128xf32> to vector<8x128xbf16>
      %22 = arith.index_cast %18 : i32 to index
      %c128 = arith.constant 128 : index
      %23 = vector.load %arg7[%22, %c128] : memref<16x384xf32, #tpu.memory_space<vmem>>, vector<8x128xf32>
      %24 = arith.truncf %23 : vector<8x128xf32> to vector<8x128xbf16>
      %25 = arith.index_cast %18 : i32 to index
      %c256 = arith.constant 256 : index
      %26 = vector.load %arg7[%25, %c256] : memref<16x384xf32, #tpu.memory_space<vmem>>, vector<8x128xf32>
      %27 = arith.truncf %26 : vector<8x128xf32> to vector<8x128xbf16>
      %cst_18 = arith.constant dense<0.000000e+00> : vector<8x8xf32>
      %28 = tpu.matmul %21, %24, %cst_18 {dimension_numbers = #tpu.dot_dimension_numbers<[1], [1], [0], [0], [0, 0, 1, 0], [], []>} : vector<8x128xbf16>, vector<8x128xbf16>, vector<8x8xf32> -> vector<8x8xf32>
      %cst_19 = arith.constant dense<0xFF800000> : vector<8xf32>
      %29 = vector.multi_reduction <maximumf>, %28, %cst_19 [1] : vector<8x8xf32> to vector<8xf32>
      %30 = vector.shape_cast %29 : vector<8xf32> to vector<8x1xf32>
      %31 = vector.broadcast %30 : vector<8x1xf32> to vector<8x8xf32>
      %32 = arith.subf %28, %31 : vector<8x8xf32>
      %33 = math.exp %32 : vector<8x8xf32>
      %cst_20 = arith.constant dense<0.000000e+00> : vector<8xf32>
      %34 = vector.multi_reduction <add>, %33, %cst_20 [1] : vector<8x8xf32> to vector<8xf32>
      %35 = vector.shape_cast %34 : vector<8xf32> to vector<8x1xf32>
      %36 = tpu.reciprocal %35 {approx = true} : vector<8x1xf32> -> vector<8x1xf32>
      %37 = vector.broadcast %36 : vector<8x1xf32> to vector<8x8xf32>
      %38 = arith.mulf %33, %37 : vector<8x8xf32>
      %39 = arith.truncf %38 : vector<8x8xf32> to vector<8x8xbf16>
      %cst_21 = arith.constant dense<0.000000e+00> : vector<8x128xf32>
      %40 = tpu.matmul %39, %27, %cst_21 {dimension_numbers = #tpu.dot_dimension_numbers<[1], [0], [0], [1], [0, 0, 1, 1], [], []>} : vector<8x8xbf16>, vector<8x128xbf16>, vector<8x128xf32> -> vector<8x128xf32>
      %41 = arith.index_cast %18 : i32 to index
      %c0_22 = arith.constant 0 : index
      %42 = vector.load %arg8[%41, %c0_22] : memref<16x128xf32, #tpu.memory_space<vmem>>, vector<8x128xf32>
      tpu.vector_store %arg8[%41, %c0_22], %40 {strides = array<i32>} : memref<16x128xf32, #tpu.memory_space<vmem>>, vector<8x128xf32>,
    }
    %c2_i32_7 = arith.constant 2 : i32
    %c0_8 = arith.constant 0 : index
    %c0_9 = arith.constant 0 : index
    %9 = vector.load %arg8[%c0_8, %c0_9] : memref<16x128xf32, #tpu.memory_space<vmem>>, vector<16x128xf32>
    %10 = arith.truncf %9 : vector<16x128xf32> to vector<16x128xbf16>
    %c0_10 = arith.constant 0 : index
    %c0_11 = arith.constant 0 : index
    %11 = vector.load %arg4[%c0_10, %c0_11] : memref<128x32xbf16, #tpu.memory_space<vmem>>, vector<128x32xbf16>
    %cst_12 = arith.constant dense<0.000000e+00> : vector<16x32xf32>
    %12 = tpu.matmul %10, %11, %cst_12 {dimension_numbers = #tpu.dot_dimension_numbers<[1], [0], [0], [1], [0, 0, 1, 1], [], []>} : vector<16x128xbf16>, vector<128x32xbf16>, vector<16x32xf32> -> vector<16x32xf32>
    %c0_13 = arith.constant 0 : index
    %c0_14 = arith.constant 0 : index
    %13 = vector.load %arg5[%c0_13, %c0_14] : memref<1x32xf32, #tpu.memory_space<vmem>>, vector<1x32xf32>
    %14 = vector.broadcast %13 : vector<1x32xf32> to vector<16x32xf32>
    %15 = arith.addf %12, %14 : vector<16x32xf32>
    %c0_15 = arith.constant 0 : index
    %c0_16 = arith.constant 0 : index
    %16 = vector.load %arg6[%c0_15, %c0_16] : memref<16x32xf32, #tpu.memory_space<vmem>>, vector<16x32xf32>
    tpu.vector_store %arg6[%c0_15, %c0_16], %15 {strides = array<i32>} : memref<16x32xf32, #tpu.memory_space<vmem>>, vector<16x32xf32>,
    return
  }
  func.func @transform_0(%arg0: i32) -> (i32, i32) {
    %c0_i32 = arith.constant 0 : i32
    %c0_i32_0 = arith.constant 0 : i32
    return %arg0, %c0_i32 : i32, i32
  }
  func.func @transform_1(%arg0: i32) -> (i32, i32) {
    %c0_i32 = arith.constant 0 : i32
    %c0_i32_0 = arith.constant 0 : i32
    %c0_i32_1 = arith.constant 0 : i32
    return %c0_i32, %c0_i32_0 : i32, i32
  }
  func.func @transform_2(%arg0: i32) -> (i32, i32) {
    %c0_i32 = arith.constant 0 : i32
    %c0_i32_0 = arith.constant 0 : i32
    %c0_i32_1 = arith.constant 0 : i32
    return %c0_i32, %c0_i32_0 : i32, i32
  }
  func.func @transform_3(%arg0: i32) -> (i32, i32) {
    %c0_i32 = arith.constant 0 : i32
    %c0_i32_0 = arith.constant 0 : i32
    %c0_i32_1 = arith.constant 0 : i32
    return %c0_i32, %c0_i32_0 : i32, i32
  }
  func.func @transform_4(%arg0: i32) -> (i32, i32) {
    %c0_i32 = arith.constant 0 : i32
    %c0_i32_0 = arith.constant 0 : i32
    %c0_i32_1 = arith.constant 0 : i32
    return %c0_i32, %c0_i32_0 : i32, i32
  }
  func.func @transform_5(%arg0: i32) -> (i32, i32) {
    %c0_i32 = arith.constant 0 : i32
    %c0_i32_0 = arith.constant 0 : i32
    return %arg0, %c0_i32 : i32, i32
  }
}

</mosaic_0001>

<bundles_post_ra>
// kernel: tpu_custom_call.1
= control target key start
LH: loop header
LB: loop body
LE: loop exit
PB: predicated region body
PF: predicated region fallthrough
CT: control target
= control target key end

     0   :  { %10 = vsyncpa [#allocation5], 0  ;;  %vm73_vm0 = vcmask 261120   ;;  %s561_s0 = inlined_call_operand.vmem [shape: f32[16,32], index: 0, kind: input, shape index: {}]   ;;  %s562_s1 = inlined_call_operand.vmem [shape: bf16[32,384], index: 1, kind: input, shape index: {}]   ;;  %s563_s2 = inlined_call_operand.vmem [shape: f32[1,384], index: 2, kind: input, shape index: {}]   ;;  %s564_s3 = inlined_call_operand.vmem [shape: bf16[128,32], index: 3, kind: input, shape index: {}]   ;;  %s565_s4 = inlined_call_operand.vmem [shape: f32[1,32], index: 4, kind: input, shape index: {}]   ;;  %s566_s5 = inlined_call_operand.hbm [shape: f32[16,32], index: 5, kind: output, shape index: {}]  }
   0x1   :  { %v319_v0 = vld [vmem:[%s562_s1 + $0x18] sm:$0xf]  ;;  %v371_v1 = vld [vmem:[%s562_s1 + $0x20] sm:$0xf0]  ;;  %v370_v3 = vld [vmem:[%s562_s1 + $0x1c] sm:$0xf] }
   0x2   :  { %v320_v2 = vor.u32 %v371_v1, %v319_v0  ;;  %v321_v4 = vld [vmem:[%s562_s1 + $0x24] sm:$0xf0]  ;;  %v327_v5 = vld [vmem:[%s562_s1 + $0x20] sm:$0xf]  ;;  %v372_v7 = vld [vmem:[%s562_s1 + $0x28] sm:$0xf0] }
   0x3   :  { %v324_v6 = vor.u32 %v370_v3, %v321_v4  ;;  %v307_v8 = vld [vmem:[%s562_s1] sm:$0xf]  ;;  %v368_v9 = vld [vmem:[%s562_s1 + $0x8] sm:$0xf0]  ;;  %v328_v10 = vor.u32 %v372_v7, %v327_v5  ;;  %v367_v12 = vld [vmem:[%s562_s1 + $0x4] sm:$0xf] }
   0x4   :  { %83 = vmatpush.bf16.msra.mxu0 %v320_v2  ;;  %v308_v11 = vor.u32 %v368_v9, %v307_v8  ;;  %v309_v13 = vld [vmem:[%s562_s1 + $0xc] sm:$0xf0]  ;;  %v315_v14 = vld [vmem:[%s562_s1 + $0x8] sm:$0xf]  ;;  %v369_v16 = vld [vmem:[%s562_s1 + $0x10] sm:$0xf0] }
   0x5   :  { %97 = vmatpush.bf16.msra.mxu1 %v324_v6  ;;  %v312_v15 = vor.u32 %v367_v12, %v309_v13  ;;  %v22_v17 = vld [vmem:[%s561_s0] sm:$0xff]  ;;  %v23_v18 = vld [vmem:[%s561_s0 + $0x8] sm:$0xff]  ;;  %111 = vmatpush.bf16.msra.mxu2 %v328_v10  ;;  %v316_v19 = vor.u32 %v369_v16, %v315_v14  ;;  %s513_s0 = smov 0  }
   0x6   :  { %v24_v20 = vpack.c.bf16 %v23_v18, %v22_v17  ;;  %v33_v21 = vld [vmem:[%s563_s2] sm:$0x7] }
   0x7   :  { %v35_v22 = vperm.slane %v33_v21, 0  ;;  %v36_v23 = vperm.slane %v33_v21, 1  ;;  %v37_v28 = vperm.slane %v33_v21, 2 }
   0x8   :  { %84 = vmatpush.bf16.msra.mxu0 %v308_v11 }
   0x9   :  { %98 = vmatpush.bf16.msra.mxu1 %v312_v15  ;;  %112 = vmatpush.bf16.msra.mxu2 %v316_v19 }
   0xb   :  { %329 = vmatmul.msk.bf16.vlgmr.msra.gmra.mxu0 %vm73_vm0, %v24_v20 }
   0xc   :  { %330 = vmatmul.msk.bf16.vlgmr.msra.gmra.mxu1 %vm73_vm0, %v24_v20  ;;  %331 = vmatmul.msk.bf16.vlgmr.msra.gmra.mxu2 %vm73_vm0, %v24_v20 }
  0x88   :  { %v86_v24 = vpop.f32.mrf.mxu0 }
  0x89   :  { %v87_v25 = vadd.f32 %v86_v24, %v35_v22  ;;  %v100_v26 = vpop.f32.mrf.mxu1 }
  0x8a   :  { %v101_v27 = vadd.f32 %v100_v26, %v36_v23 }
  0x8b   :  { %119 = vst [vmem:[#allocation2] sm:$0xff] %v87_v25 }
  0x8c   :  { %120 = vst [vmem:[#allocation2 + $0x8] sm:$0xff] %v101_v27 }
  0x8f   :  { %v114_v29 = vpop.f32.mrf.mxu2 }
  0x90   :  { %v88_v30 = vpop.f32.mrf.mxu0  ;;  %v115_v31 = vadd.f32 %v114_v29, %v37_v28 }
  0x91   :  { %v89_v32 = vadd.f32 %v88_v30, %v35_v22  ;;  %v102_v33 = vpop.f32.mrf.mxu1 }
  0x92   :  { %v103_v34 = vadd.f32 %v102_v33, %v36_v23  ;;  %121 = vst [vmem:[#allocation2 + $0x10] sm:$0xff] %v115_v31 }
  0x93   :  { %122 = vst [vmem:[#allocation2 + $0x18] sm:$0xff] %v89_v32 }
  0x94   :  { %123 = vst [vmem:[#allocation2 + $0x20] sm:$0xff] %v103_v34 }
  0x97   :  { %v116_v35 = vpop.f32.mrf.mxu2 }
  0x98   :  { %v117_v36 = vadd.f32 %v116_v35, %v37_v28 }
  0x9a   :  { %124 = vst [vmem:[#allocation2 + $0x28] sm:$0xff] %v117_v36 }
  0x9b LB: > { %s332_s2 = sshll.u32 %s430_s0, 3  ;;  %vm156_vm1 = vcmask 64512   ;;  %vm172_vm2 = vcmask 1043456   ;;  %s130_s0 = sadd.s32 1, %s430_s0   ;;  %s430_s0 = sphi %s513_s0, %s130_s0  }
  0x9c   : > { %s132_s22 = sshra.s32 %s332_s2, 3  ;;  %s189_s25 = scalar_lea.vmem [#allocation3], %s332_s2 }
  0x9d   : > { %s373_s23 = smul.u32 24, %s132_s22  ;;  %p127_p0 = scmp.ge.s32.totalorder %s130_s0, 2  }
  0x9e   :  { %v381_v58 = vld [vmem:[%s564_s3 + $0x38] sm:$0xff] (%p127_p0)  ;;  %v380_v59 = vld [vmem:[%s564_s3 + $0x30] sm:$0xff] (%p127_p0)  ;;  %v379_v60 = vld [vmem:[%s564_s3 + $0x28] sm:$0xff] (%p127_p0)  ;;  %s432_s19 = smov (%p127_p0), [#allocation4]   ;;  %s284_s0 = sshll.u32 (%p127_p0), %s566_s5, 4  ;;  %s285_s0 = int_to_ptr.hbm [resolvable:$true] %s284_s0 }
  0x9f   : > { %s136_s24 = scalar_lea.vmem [#allocation2], %s373_s23  ;;  %v378_v61 = vld [vmem:[%s564_s3 + $0x20] sm:$0xff] (%p127_p0)  ;;  %v377_v62 = vld [vmem:[%s564_s3 + $0x18] sm:$0xff] (%p127_p0)  ;;  %v376_v63 = vld [vmem:[%s564_s3 + $0x10] sm:$0xff] (%p127_p0)  ;;  %s282_s20 = sshll.u32 (%p127_p0), %s432_s19, 4  ;;  %s283_s20 = int_to_ptr.vmem [resolvable:$true] %s282_s20 }
  0xa0   :  { %v375_v0 = vld [vmem:[%s564_s3 + $0x8] sm:$0xff] (%p127_p0)  ;;  %v374_v1 = vld [vmem:[%s564_s3] sm:$0xff] (%p127_p0)  ;;  %s433_s3 = smov (%p127_p0), 128   ;;  %s434_s2 = smov (%p127_p0), 8  }
  0xa1   : > { %v139_v37 = vld [vmem:[%s136_s24 + $0x8] sm:$0xff]  ;;  %v137_v39 = vld [vmem:[%s136_s24] sm:$0xff]  ;;  %v141_v49 = vld [vmem:[%s136_s24 + $0x10] sm:$0xff] }
  0xa2   : > { %v140_v38 = vpack.c.bf16 %v139_v37, %v139_v37  ;;  %v138_v40 = vpack.c.bf16 %v137_v39, %v137_v39  ;;  %v142_v50 = vpack.c.bf16 %v141_v49, %v141_v49  ;;  %v397_v5 = vld [vmem:[%s565_s4] ss:$0 sm:$0xff] (%p127_p0) }
  0xa4   : > { %150 = vmatpush.bf16.xpose.msra.mxu0 %v140_v38  ;;  %v174_v51 = vsel %vm172_vm2, %v142_v50, 0 }
  0xa5   : > { %183 = vmatpush.bf16.msra.mxu1 %v174_v51 }
  0xab   : > { %151 = vmatmul.bf16.vlgmr.msra.gmra.mxu0 %v138_v40 }
  0xac   :  { %262 = vmatpush.bf16.msra.mxu0 (%p127_p0), %v381_v58 }
  0xb0   :  { %263 = vmatpush.bf16.msra.mxu0 (%p127_p0), %v380_v59 }
  0xb4   :  { %264 = vmatpush.bf16.msra.mxu0 (%p127_p0), %v379_v60 }
  0xb8   :  { %265 = vmatpush.bf16.msra.mxu0 (%p127_p0), %v378_v61 }
  0xbc   :  { %266 = vmatpush.bf16.msra.mxu0 (%p127_p0), %v377_v62 }
  0xc0   :  { %267 = vmatpush.bf16.msra.mxu0 (%p127_p0), %v376_v63 }
  0xc4   :  { %268 = vmatpush.bf16.msra.mxu0 (%p127_p0), %v375_v0 }
  0xc8   :  { %269 = vmatpush.bf16.msra.mxu0 (%p127_p0), %v374_v1 }
 0x128   : > { %v152_v41 = vpop.f32.mrf.mxu0 }
 0x129   : > { %v157_v42 = vsel %vm156_vm1, %v152_v41, -inf }
 0x12a   : > { %158 = vmax.xlane.f32.xlu0 %v157_v42 }
 0x130   : > { %v154_v43 = vpop.f32.mrf.mxu0 }
 0x19d   : > { %v159_v44 = vpop.xlane.xlu0 %158 }
 0x19e   : > { %v160_v45 = vsub.f32 %v152_v41, %v159_v44 }
 0x1a0   : > { %v161_v46 = vmul.f32 1.442695, %v160_v45 }
 0x1a2   : > { %393 = vpow2.f32 %v161_v46 }
 0x1a8   : > { %v394_v47 = vpop.eup %393 }
 0x1a9   : > { %v163_v48 = vsel %vm156_vm1, %v394_v47, 0.0 }
 0x1aa   : > { %164 = vadd.xlane.f32.xlu0 %v163_v48 }
 0x21d   : > { %v165_v52 = vpop.xlane.xlu0 %164 }
 0x21e   : > { %395 = vrcp.f32 %v165_v52 }
 0x224   : > { %v396_v53 = vpop.eup %395 }
 0x225   : > { %v167_v54 = vmul.f32 %v396_v53, %v394_v47 }
 0x227   : > { %v168_v55 = vpack.c.bf16 %v167_v54, %v167_v54 }
 0x229   : > { %334 = vmatmul.msk.bf16.vlgmr.msra.gmra.mxu1 %vm156_vm1, %v168_v55 }
 0x2a6   : > { %v185_v56 = vpop.f32.mrf.mxu1 }
 0x2a7   : > { %190 = vst [vmem:[%s189_s25] sm:$0xff] %v185_v56 }
 0x2aa   :  { %129 = sbr.rel (!%p127_p0) target bundleno = 155 (0x9b), region = 49 }
 0x2ae   : > { %v187_v57 = vpop.f32.mrf.mxu1  ;;  %v191_v2 = vld [vmem:[#allocation3] sm:$0xff] (%p127_p0)  ;;  %v192_v3 = vld [vmem:[#allocation3 + $0x8] sm:$0xff] (%p127_p0) }
 0x2af   :  { %v193_v4 = vpack.c.bf16 %v192_v3, %v191_v2 }
 0x2b1   :  { %270 = vmatmul.bf16.vlgmr.msra.gmra.mxu0 %v193_v4 }
 0x32e   :  { %v271_v6 = vpop.f32.mrf.mxu0 }
 0x32f   :  { %v272_v7 = vadd.f32 %v397_v5, %v271_v6 }
 0x331   :  { %276 = vst.msk [vmem:[#allocation4] sm:$0xff] %vm73_vm0, %v272_v7 }
 0x336   :  { %v273_v8 = vpop.f32.mrf.mxu0 }
 0x337   :  { %v274_v9 = vadd.f32 %v397_v5, %v273_v8 }
 0x339   :  { %277 = vst.msk [vmem:[#allocation4 + $0x8] sm:$0xff] %vm73_vm0, %v274_v9 }
 0x33a   :  { %290 = dma.vmem_to_hbm [thread:$0]  %s283_s20, 256, %s285_s0, [#allocation5], %s433_s3, %s433_s3, %s434_s2  }
 0x33b   :  { %426 = dma.done.wait [#allocation5], 256  }
 0x33c   :  { %427 = vsyncadd [#allocation5], 4294967040 }
 0x33d   :  { %295 = vsyncpa [#allocation5], 1 }

</bundles_post_ra>
